<compile_context>
chip_gen: v7x
topology: tpu7x:2x2x1
jax: 0.10.0
libtpu: 0.0.40
codegen_flags: <defaults>
</compile_context>

<pallas_src>
import jax
import jax.numpy as jnp
from jax.experimental import pallas as pl
from jax.experimental.pallas import tpu as pltpu


def shortcut_kernel(x_ref, w_ref, b_ref, o_ref):
    """x_ref: (1, C1, tn); w_ref: (tc2, C1); b_ref: (tc2, 1); o_ref: (1, tc2, tn)."""
    y = jnp.dot(w_ref[...], x_ref[0], preferred_element_type=jnp.float32)  # (tc2, tn)
    y = y + b_ref[...].astype(jnp.float32)                                 # lane broadcast
    o_ref[0] = y.astype(o_ref.dtype)                                       # lane-dense store


# ---------------------------------------------------------------------------
# Tile sizing (VMEM-budget driven).
# ---------------------------------------------------------------------------

def _vmem_budget():
    """Return (data-buffer budget, scoped vmem limit) in bytes for this chip."""
    try:
        cap = int(getattr(pltpu.get_tpu_info(), "vmem_capacity_bytes", 64 << 20))
    except Exception:
        cap = 64 << 20                      # conservative fallback: v7x per-core VMEM
    cap = max(cap, 32 << 20)
    limit = min(cap - (8 << 20), 96 << 20)  # raise v5e 16 MiB / v6e 32 MiB defaults
    budget = min(int(cap * 0.65), 48 << 20, limit - (8 << 20))
    return budget, limit


def _fits(tn, c1, tc2, itemsize, budget):
    x_buf = 2 * c1 * tn * itemsize          # double-buffered x tile
    o_buf = 2 * tc2 * tn * itemsize         # double-buffered out tile
    w_buf = 2 * tc2 * c1 * itemsize         # weight tile (pipeline copy included)
    b_buf = 2 * tc2 * 128 * itemsize        # bias (lane-padded), tiny
    return x_buf + o_buf + w_buf + b_buf <= budget


def _choose_c2_tile(c1, c2, n128, itemsize, budget):
    """Tile C2 only when a full-C2 output tile + weight can't fit the budget."""
    tn_min = min(512, n128)
    tc2 = c2
    while (not _fits(tn_min, c1, tc2, itemsize, budget)
           and tc2 % 2 == 0 and (tc2 // 2) % 32 == 0):
        tc2 //= 2
    return tc2


def _choose_spatial_tile(m, c1, tc2, itemsize, budget, need_split):
    """Largest k dividing m such that a 128*k-lane tile fits the VMEM budget."""
    best = 1
    for k in range(1, m + 1):
        if m % k != 0:
            continue
        if need_split and m > 1 and k == m:
            continue                          # keep >= 2 grid steps (v7x megacore)
        if _fits(128 * k, c1, tc2, itemsize, budget):
            best = max(best, k)
    return 128 * best


# ---------------------------------------------------------------------------
# Wrapper.
# ---------------------------------------------------------------------------

def shortcut(x_nchw, w_conv, b_conv):
    """ShortCut.forward: y = Conv2d(c1, c2, 1, 1)(x).

    x_nchw : (B, C1, H, W)
    w_conv : (C2, C1, 1, 1)   (PyTorch conv weight layout)
    b_conv : (C2,)
    """
    b, c1, h, w = x_nchw.shape
    c2 = w_conv.shape[0]
    n = h * w
    dtype = x_nchw.dtype
    itemsize = jnp.dtype(dtype).itemsize

    n128 = ((n + 127) // 128) * 128          # pad N up to a lane multiple once
    m = n128 // 128

    budget, vmem_limit = _vmem_budget()
    tc2 = _choose_c2_tile(c1, c2, n128, itemsize, budget)
    c2t = c2 // tc2
    need_split = (b * c2t) < 2               # ensure >= 2 parallel grid steps
    tn = _choose_spatial_tile(m, c1, tc2, itemsize, budget, need_split)
    nt = n128 // tn

    x_bcn = x_nchw.reshape(b, c1, n)         # pure reshape, no transpose
    if n128 != n:
        x_bcn = jnp.pad(x_bcn, ((0, 0), (0, 0), (0, n128 - n)))
    w2d = w_conv.reshape(c2, c1).astype(dtype)
    b2d = b_conv.reshape(c2, 1).astype(dtype)

    cost = pl.CostEstimate(
        flops=2 * b * n128 * c1 * c2,
        transcendentals=0,
        bytes_accessed=(b * n128 * (c1 + c2) + c1 * c2 + c2) * itemsize)

    out_bcn = pl.pallas_call(
        shortcut_kernel,
        out_shape=jax.ShapeDtypeStruct((b, c2, n128), dtype),
        grid_spec=pltpu.PrefetchScalarGridSpec(
            num_scalar_prefetch=0,
            grid=(b, c2t, nt),
            in_specs=[
                pl.BlockSpec((1, c1, tn), lambda i, c, j: (i, 0, j)),   # x tile
                pl.BlockSpec((tc2, c1), lambda i, c, j: (c, 0)),        # weight (VMEM resident)
                pl.BlockSpec((tc2, 1), lambda i, c, j: (c, 0)),         # bias   (VMEM resident)
            ],
            out_specs=pl.BlockSpec((1, tc2, tn), lambda i, c, j: (i, c, j)),
        ),
        compiler_params=pltpu.CompilerParams(
            dimension_semantics=("parallel", "parallel", "parallel"),
            vmem_limit_bytes=vmem_limit),
        cost_estimate=cost,
    )(x_bcn, w2d, b2d)

    if n128 != n:
        out_bcn = out_bcn[:, :, :n]
    return out_bcn.reshape(b, c2, h, w)


def shortcut_reference(x, w_conv, b_conv):
    """Pure-JAX reference mirroring the PyTorch 1x1 conv exactly."""
    c2, c1 = w_conv.shape[0], w_conv.shape[1]
    y = jnp.einsum('bchw,oc->bohw', x, w_conv.reshape(c2, c1))
    return y + b_conv[None, :, None, None]


if __name__ == "__main__":
    key = jax.random.PRNGKey(0)

    # Case 1: lane-aligned spatial size (H*W is a multiple of 128).
    B, C1, C2, H, W = 2, 4, 8, 16, 16
    kx, kw, kb, key = jax.random.split(key, 4)
    x = jax.random.normal(kx, (B, C1, H, W), dtype=jnp.float32)
    wc = 0.1 * jax.random.normal(kw, (C2, C1, 1, 1), dtype=jnp.float32)
    bc = 0.1 * jax.random.normal(kb, (C2,), dtype=jnp.float32)

    y = jax.block_until_ready(shortcut(x, wc, bc))
    y_ref = shortcut_reference(x, wc, bc)
    assert y.shape == (B, C2, H, W) and y.dtype == x.dtype
    assert jnp.allclose(y, y_ref, rtol=1e-3, atol=1e-3), "mismatch vs reference (case 1)"

    # Case 2: non-multiple-of-128 H*W -> exercises the lane-padding path.
    B2, C1b, C2b, H2, W2 = 1, 3, 5, 10, 10
    kx2, kw2, kb2, key = jax.random.split(key, 4)
    x2 = jax.random.normal(kx2, (B2, C1b, H2, W2), dtype=jnp.float32)
    wc2 = 0.1 * jax.random.normal(kw2, (C2b, C1b, 1, 1), dtype=jnp.float32)
    bc2 = 0.1 * jax.random.normal(kb2, (C2b,), dtype=jnp.float32)

    y2 = jax.block_until_ready(shortcut(x2, wc2, bc2))
    y2_ref = shortcut_reference(x2, wc2, bc2)
    assert y2.shape == (B2, C2b, H2, W2)
    assert jnp.allclose(y2, y2_ref, rtol=1e-3, atol=1e-3), "mismatch vs reference (case 2)"

    print("KERNEL_OK")
</pallas_src>

<mosaic_0001>
module attributes {stable_mosaic.version = 11 : i64} {
  func.func @shortcut_kernel(%arg0: i32, %arg1: i32, %arg2: i32, %arg3: memref<1x4x256xf32, #tpu.memory_space<vmem>>, %arg4: memref<8x4xf32, #tpu.memory_space<vmem>>, %arg5: memref<8x1xf32, #tpu.memory_space<vmem>>, %arg6: memref<1x8x256xf32, #tpu.memory_space<vmem>>) attributes {dimension_semantics = [#tpu.dimension_semantics<parallel>, #tpu.dimension_semantics<parallel>, #tpu.dimension_semantics<parallel>], iteration_bounds = array<i64: 2, 1, 1>, scalar_prefetch = 0 : i64, scratch_operands = 0 : i64, tpu.core_type = #tpu.core_type<tc>, window_params = [{transform_indices = @transform_0, window_bounds = array<i64: 1, 4, 256>}, {transform_indices = @transform_1, window_bounds = array<i64: 8, 4>}, {transform_indices = @transform_2, window_bounds = array<i64: 8, 1>}, {transform_indices = @transform_3, window_bounds = array<i64: 1, 8, 256>}]} {
    %c0 = arith.constant 0 : index
    %c0_0 = arith.constant 0 : index
    %0 = vector.load %arg4[%c0, %c0_0] : memref<8x4xf32, #tpu.memory_space<vmem>>, vector<8x4xf32>
    %c0_1 = arith.constant 0 : index
    %c0_2 = arith.constant 0 : index
    %c0_3 = arith.constant 0 : index
    %1 = vector.load %arg3[%c0_1, %c0_2, %c0_3] : memref<1x4x256xf32, #tpu.memory_space<vmem>>, vector<1x4x256xf32>
    %2 = vector.shape_cast %1 : vector<1x4x256xf32> to vector<4x256xf32>
    %cst = arith.constant dense<0.000000e+00> : vector<8x256xf32>
    %3 = tpu.matmul %0, %2, %cst {dimension_numbers = #tpu.dot_dimension_numbers<[1], [0], [0], [1], [0, 0, 1, 1], [], []>} : vector<8x4xf32>, vector<4x256xf32>, vector<8x256xf32> -> vector<8x256xf32>
    %c0_4 = arith.constant 0 : index
    %c0_5 = arith.constant 0 : index
    %4 = vector.load %arg5[%c0_4, %c0_5] : memref<8x1xf32, #tpu.memory_space<vmem>>, vector<8x1xf32>
    %5 = vector.broadcast %4 : vector<8x1xf32> to vector<8x256xf32>
    %6 = arith.addf %3, %5 : vector<8x256xf32>
    %c0_6 = arith.constant 0 : index
    %c0_7 = arith.constant 0 : index
    %c0_8 = arith.constant 0 : index
    %7 = vector.load %arg6[%c0_6, %c0_7, %c0_8] : memref<1x8x256xf32, #tpu.memory_space<vmem>>, vector<1x8x256xf32>
    %8 = vector.shape_cast %7 : vector<1x8x256xf32> to vector<8x256xf32>
    %9 = vector.shape_cast %6 : vector<8x256xf32> to vector<1x8x256xf32>
    tpu.vector_store %arg6[%c0_6, %c0_7, %c0_8], %9 {strides = array<i32>} : memref<1x8x256xf32, #tpu.memory_space<vmem>>, vector<1x8x256xf32>,
    return
  }
  func.func @transform_0(%arg0: i32, %arg1: i32, %arg2: i32) -> (i32, i32, i32) {
    %c0_i32 = arith.constant 0 : i32
    %c0_i32_0 = arith.constant 0 : i32
    return %arg0, %c0_i32, %arg2 : i32, i32, i32
  }
  func.func @transform_1(%arg0: i32, %arg1: i32, %arg2: i32) -> (i32, i32) {
    %c0_i32 = arith.constant 0 : i32
    %c0_i32_0 = arith.constant 0 : i32
    return %arg1, %c0_i32 : i32, i32
  }
  func.func @transform_2(%arg0: i32, %arg1: i32, %arg2: i32) -> (i32, i32) {
    %c0_i32 = arith.constant 0 : i32
    %c0_i32_0 = arith.constant 0 : i32
    return %arg1, %c0_i32 : i32, i32
  }
  func.func @transform_3(%arg0: i32, %arg1: i32, %arg2: i32) -> (i32, i32, i32) {
    %c0_i32 = arith.constant 0 : i32
    return %arg0, %arg1, %arg2 : i32, i32, i32
  }
}

</mosaic_0001>

<bundles_post_ra>
// kernel: tpu_custom_call.1
= control target key start
LH: loop header
LB: loop body
LE: loop exit
PB: predicated region body
PF: predicated region fallthrough
CT: control target
= control target key end

     0   :  { %8 = vsyncpa [#allocation3], 0  ;;  %s765_s0 = inlined_call_operand.vmem [shape: f32[2,4,256], index: 0, kind: input, shape index: {}]   ;;  %s766_s1 = inlined_call_operand.vmem [shape: f32[8,4], index: 1, kind: input, shape index: {}]   ;;  %s767_s2 = inlined_call_operand.vmem [shape: f32[8,1], index: 2, kind: input, shape index: {}]   ;;  %s768_s3 = inlined_call_operand.hbm [shape: f32[2,8,256], index: 3, kind: output, shape index: {}]  }
   0x1   :  { %10 = vsyncpa [#allocation3 + $0x1], 0  ;;  %s647_s12 = smov 0   ;;  %s649_s13 = smov 0  }
   0x2   :  { %s651_s14 = smov 0   ;;  %s653_s15 = smov 0  }
   0x3   :  { %s655_s16 = smov 0   ;;  %s657_s17 = smov 0  }
   0x4 LB: > { %s465_s18 = sadd.s32 4294967295, %s622_s17   ;;  %s466_s19 = sadd.s32 4294967294, %s622_s17   ;;  %s622_s17 = sphi %s657_s17, %s16_s17   ;;  %s618_s16 = sphi %s655_s16, %s775_s16   ;;  %s614_s15 = sphi %s653_s15, %s774_s15   ;;  %s610_s14 = sphi %s651_s14, %s773_s14   ;;  %s606_s13 = sphi %s649_s13, %s772_s13   ;;  %s602_s12 = sphi %s647_s12, %s771_s12  }
   0x5   : > { %s35_s20 = sadd.s32 1, %s618_s16  ;;  %s126_s21 = sadd.s32 1, %s610_s14 }
   0x6   : > { %p37_p0 = scmp.ge.s32.totalorder %s35_s20, 2  ;;  %p136_p1 = scmp.ne.s32.totalorder %s610_s14, %s606_s13 }
   0x7   : > { %p137_p2 = scmp.eq.s32.totalorder %s465_s18, 1  ;;  %p142_p3 = scmp.ne.s32.totalorder %s606_s13, %s602_s12 }
   0x8   : > { %s777_s20 = smov (%p37_p0, %s35_s20), 0  ;;  %p143_p5 = scmp.eq.s32.totalorder %s466_s19, 1 }
   0x9   : > { %p687_p4 = por %p137_p2, %p136_p1  ;;  %s119_s23 = ssub.s32 %s618_s16, %s777_s20 }
   0xa   : > { %p471_p6 = scmp.ge.s32.totalorder %s622_s17, 1  ;;  %p124_p7 = scmp.eq.s32.totalorder %s119_s23, 0 }
   0xb   : > { %p694_p8 = por %p143_p5, %p142_p3  ;;  %p188_p9 = scmp.lt.s32.totalorder %s622_s17, 3 }
   0xc   : > { %s700_s25 = scalar_select %p124_p7, %s610_s14, %s126_s21  }
   0xd   : > { %p189_p10 = pnand %p471_p6, %p188_p9 }
   0xe   : > { %p225_p11 = scmp.lt.s32.totalorder (!%p189_p10), %s614_s15, 1  ;;  %v624_v0 = vmov (!%p189_p10), 0.0   ;;  %v625_v1 = vmov (!%p189_p10), 0   ;;  %v245_v2 = vld [vmem:[%s767_s2] sm:$0xff] (!%p189_p10)  ;;  %vm257_vm0 = vcmask (!%p189_p10), 1043456   ;;  %vm253_vm1 = vcmask (!%p189_p10), 31744  }
   0xf   : > { %192 = sbr.rel (%p189_p10) target bundleno = 260 (0x104), region = 32  ;;  %326 = vmatprep.mubr.f32.mxu0 (!%p189_p10), %v624_v0  ;;  %542 = vset.pattern.permute.xlu0 (!%p189_p10), %v625_v1  ;;  %v243_v5 = vld [vmem:[%s766_s1] sm:$0xff] (!%p189_p10)  ;;  %s221_s8 = sand.u32 (!%p189_p10), 1, %s606_s13  }
  0x10   : > { %248 = vperm.xlu0 (!%p189_p10), %542, %v245_v2   ;;  %s472_s9 = sshll.u32 (!%p189_p10), %s221_s8, 4  ;;  %s484_s10 = sshll.u32 (!%p189_p10), %s614_s15, 8 }
  0x11   : > { %s223_s11 = scalar_lea.vmem (!%p189_p10), [#allocation2], %s472_s9  ;;  %s718_s23 = scalar_lea.hbm (!%p189_p10), %s768_s3, %s484_s10 }
  0x12   : > { %s354_s18 = sshll.u32 (!%p189_p10), %s223_s11, 4  ;;  %s336_s26 = scalar_lea.sflag (!%p189_p10), [#allocation3], %s221_s8  ;;  %s720_s18 = int_to_ptr.vmem [resolvable:$true] %s354_s18 }
  0x13   : > { %s626_s27 = smov (!%p189_p10), [#allocation2]  }
  0x16   : > { %s226_s28 = scalar_select %p225_p11, %s614_s15, 1 }
  0x17   : > { %s544_s15 = scalar_lea.vmem %s720_s18, 256 }
  0x18   : > { %s483_s29 = sshll.u32 %s226_s28, 3  ;;  %p545_p12 = scmp.ne.s32.totalorder %s720_s18, %s544_s15 }
  0x19   : > { %s232_s5 = scalar_lea.vmem %s765_s0, %s483_s29  ;;  %s548_s28 = sshll.u32 %s626_s27, 4  ;;  %s549_s28 = int_to_ptr.vmem [resolvable:$false] %s548_s28 }
  0x1a   : > { %v244_v3 = vld [vmem:[%s232_s5] sm:$0xff]  ;;  %p546_p13 = pnand %p545_p12, %p687_p4  ;;  %s550_s29 = scalar_lea.vmem %s549_s28, 512 }
  0x1b   : > { %v252_v4 = vcombine.high %v244_v3, %v244_v3  ;;  %p551_p1 = scmp.lt.s32.totalorder %s720_s18, %s549_s28  ;;  %p552_p2 = scmp.lt.s32.totalorder %s550_s29, %s544_s15 }
  0x1c   : > { %p547_p0 = pneg %p546_p13 }
  0x1d   : > { %475 = vmatprep.subr.msk.mxu0 %vm257_vm0, %v252_v4  ;;  %p553_p3 = por %p552_p2, %p551_p1 }
  0x1e   : > { %476 = vmatpush1.msk.msra.mxu0 %vm257_vm0, %v244_v3 }
  0x1f   : > { %477 = vmatmul.mubr.msk.f32.vlgmr.msra.gmra.mrb[0].mxu0 %vm253_vm1, %v243_v5  ;;  %p554_p5 = pnand %p553_p3, %p547_p0 }
  0x8f   : > { %v249_v6 = vpop.permute.xlu0 %248 }
  0xf2   : > { %v328_v7 = vpop.f32.mrb[0].mxu0 }
  0xf3   : > { %v329_v8 = vadd.f32 %v328_v7, %v249_v6  ;;  %v330_v9 = vpop.f32.mrb[1].mxu0 }
  0xf4   : > { %v331_v10 = vadd.f32 %v330_v9, %v249_v6 }
  0xf5   : > { %333 = vst [vmem:[%s223_s11] sm:$0xff] %v329_v8 }
  0xf6   : > { %334 = vst [vmem:[%s223_s11 + $0x8] sm:$0xff] %v331_v10 }
  0xf7   : > { %557 = shalt.err (!%p554_p5)
}
  0xf8   : > { %s558_s30 = scalar_lea.hbm %s718_s23, 256  ;;  %s562_s6 = scalar_lea.hbm %s768_s3, 512 }
  0xf9   : > { %p559_p6 = scmp.ne.s32.totalorder %s718_s23, %s558_s30  ;;  %p563_p10 = scmp.lt.u32.totalorder %s718_s23, %s768_s3 }
  0xfa   : > { %p564_p11 = scmp.lt.u32.totalorder %s562_s6, %s558_s30  ;;  %p566_p13 = scmp.lt.u32.totalorder %s558_s30, %s718_s23 }
  0xfb   : > { %p560_p7 = pnand %p559_p6, %p687_p4 }
  0xfc   : > { %p565_p12 = por %p564_p11, %p563_p10 }
  0xfd   : > { %p561_p9 = pneg %p560_p7 }
  0xfe   : > { %p567_p0 = por %p566_p13, %p565_p12 }
 0x100   : > { %p568_p1 = pnand %p567_p0, %p561_p9 }
 0x102   : > { %571 = shalt.err (!%p568_p1)
}
 0x103   : > { %485 = dma.vmem_to_hbm [thread:$0]  (%p687_p4), %s720_s18, 256, %s718_s23, %s336_s26  }
 0x104 PF: > { %p491_p2 = scmp.ge.s32.totalorder %s622_s17, 2  ;;  %s366_s9 = sand.u32 1, %s602_s12  }
 0x105   : > { %s367_s10 = scalar_lea.sflag [#allocation3], %s366_s9 }
 0x106   : > { %p488_p3 = pnand %p491_p2, %p694_p8 }
 0x108   : > { %597 = dma.done.wait (!%p488_p3), %s367_s10, 256  }
 0x109   : > { %599 = vsyncadd (!%p488_p3), %s367_s10, 4294967040  ;;  %s16_s17 = sadd.s32 1, %s622_s17   ;;  %s771_s12 = smov %s606_s13 }
 0x10a   : > { %p13_p5 = scmp.ge.s32.totalorder %s16_s17, 4   ;;  %s772_s13 = smov %s610_s14 }
 0x10b   : > { %s773_s14 = smov %s700_s25  ;;  %s774_s15 = smov %s618_s16 }
 0x10c   : > { %s775_s16 = smov %s777_s20  ;;  %15 = sbr.rel (!%p13_p5) target bundleno = 4 (0x4), region = 73 }
 0x113   :  { %372 = vsyncpa [#allocation3], 1 }
 0x114   :  { %374 = vsyncpa [#allocation3 + $0x1], 1 }

</bundles_post_ra>
